<compile_context>
chip_gen: v6e
topology: v6e:2x2x1
jax: 0.10.0
libtpu: 0.0.40
codegen_flags: <defaults>
</compile_context>

<pallas_src>
import jax
import jax.numpy as jnp
from jax import lax
from jax.experimental import pallas as pl
from jax.experimental.pallas import tpu as pltpu


IN_FEATURES = 49                       # 1*7*7, implied by x.reshape(-1, 1, 7, 7)
_DIMS = [(IN_FEATURES, 32), (32, 8), (8, 32), (32, IN_FEATURES)]
LANES = 128

# Fused lane layout of the (SB, 128) LHS fed to the block-diagonal weight:
#   lanes [0,49)   : x of the newest sub-block (and, in the dot OUTPUT, the
#                    finished layer-4 result of the sub-block injected 3 steps ago)
#   lanes [49,81)  : relu(h1) of the sub-block injected 1 step ago
#   lanes [81,89)  : relu(h2) of the sub-block injected 2 steps ago
#   lanes [89,121) : relu(h3) of the sub-block injected 3 steps ago
#   lane  121      : constant 1.0 (bias row of the fused weight)
#   lanes [122,128): unused (zero weight rows/cols)
_OFF_H1 = IN_FEATURES          # 49
_OFF_H2 = _OFF_H1 + 32         # 81
_OFF_H3 = _OFF_H2 + 8          # 89
ONES_LANE = _OFF_H3 + 32       # 121
PIPE = 3                       # steps between injecting x and reading its output


def _round_up(n, m):
    return (n + m - 1) // m * m


def _cdiv(a, b):
    return -(-a // b)


def _make_kernel(SB, n_sub):
    """Kernel for one (TB,128) batch tile, TB = n_sub * SB."""
    n_steps = n_sub + PIPE

    def kernel(x_ref, wf_ref, out_ref):
        cdt = x_ref.dtype
        w = wf_ref[...]                                    # (128,128) resident in VMEM
        lane = lax.broadcasted_iota(jnp.int32, (SB, LANES), 1)
        inject = (lane < IN_FEATURES) | (lane == ONES_LANE)
        drain = (lane == ONES_LANE).astype(cdt)            # zeros + 1.0 at the ones lane
        carry = jnp.zeros((SB, LANES), cdt)

        # Statically-unrolled software pipeline: one MXU pass per step.
        for s in range(n_steps):
            src = x_ref[s * SB:(s + 1) * SB, :] if s < n_sub else drain
            lhs = jnp.where(inject, src, carry)
            y = jnp.dot(lhs, w, preferred_element_type=jnp.float32)
            if s >= PIPE:
                # lanes [0,49) of y hold the (pre-ReLU) layer-4 output of
                # sub-block s-PIPE; store the full lane-dense 128 lanes and
                # slice in the wrapper.
                out_ref[(s - PIPE) * SB:(s - PIPE + 1) * SB, :] = y.astype(out_ref.dtype)
            if s + 1 < n_steps:
                carry = jnp.maximum(y, 0.0).astype(cdt)    # ReLU in f32, one narrow

    return kernel


def ae_forward(x_nchw, params, *, compute_dtype=jnp.bfloat16,
               max_tile=4096, sub_block=256):
    """x_nchw: (B, 1, 7, 7) -> (B, 1, 7, 7) in `compute_dtype`."""
    B = x_nchw.shape[0]
    x_flat = x_nchw.reshape(B, -1)                 # == torch.flatten(x, 1)
    assert x_flat.shape[1] == IN_FEATURES
    w1, b1, w2, b2, w3, b3, w4, b4 = params

    # --- fused block-diagonal weight with the biases folded into row ONES_LANE ---
    row_off = (0, _OFF_H1, _OFF_H2, _OFF_H3)       # where each layer's input lives
    col_off = (_OFF_H1, _OFF_H2, _OFF_H3, 0)       # where its output should land
    wf = jnp.zeros((LANES, LANES), jnp.float32)
    for (wl, bl), ro, co, (fi, fo) in zip(
            ((w1, b1), (w2, b2), (w3, b3), (w4, b4)), row_off, col_off, _DIMS):
        wf = wf.at[ro:ro + fi, co:co + fo].set(wl.astype(jnp.float32))
        wf = wf.at[ONES_LANE, co:co + fo].set(bl.reshape(-1).astype(jnp.float32))
    wf = wf.astype(compute_dtype)

    # --- batch tiling: tile count first, then TB, so padding waste < SB rows/tile ---
    n_tiles = max(1, _cdiv(_round_up(B, 8), max_tile))
    rows = _cdiv(B, n_tiles)
    SB = min(sub_block, _round_up(rows, 8))        # rows advanced per MXU pass
    TB = _round_up(rows, SB)                       # batch tile, multiple of SB
    B_pad = n_tiles * TB
    n_sub = TB // SB

    # --- lane-padded input: x in lanes [0,49), constant 1.0 at ONES_LANE ---
    x_pack = jnp.zeros((B_pad, LANES), jnp.float32)
    x_pack = x_pack.at[:B, :IN_FEATURES].set(x_flat.astype(jnp.float32))
    x_pack = x_pack.at[:, ONES_LANE].set(1.0)
    x_pack = x_pack.astype(compute_dtype)

    isize = jnp.dtype(compute_dtype).itemsize
    n_steps = n_sub + PIPE
    cost = pl.CostEstimate(
        flops=2 * n_tiles * n_steps * SB * LANES * LANES,
        transcendentals=0,
        bytes_accessed=(2 * B_pad * LANES + LANES * LANES) * isize,
    )
    # 2x double-buffered in + out tiles, resident weight, a few (SB,128) f32
    # temporaries, plus headroom; fits every generation's scoped VMEM.
    tile_bytes = TB * LANES * isize
    vmem_limit = int(min(100 << 20,
                         max(16 << 20,
                             4 * tile_bytes + 2 * LANES * LANES * isize
                             + 8 * SB * LANES * 4 + (4 << 20))))

    out_pack = pl.pallas_call(
        _make_kernel(SB, n_sub),
        out_shape=jax.ShapeDtypeStruct((B_pad, LANES), compute_dtype),
        grid=(n_tiles,),
        in_specs=[
            pl.BlockSpec((TB, LANES), lambda i: (i, 0)),      # batch tile of x
            pl.BlockSpec((LANES, LANES), lambda i: (0, 0)),   # resident fused weight
        ],
        out_specs=pl.BlockSpec((TB, LANES), lambda i: (i, 0)),
        compiler_params=pltpu.CompilerParams(
            dimension_semantics=("parallel",),
            vmem_limit_bytes=vmem_limit),
        cost_estimate=cost,
    )(x_pack, wf)

    return out_pack[:B, :IN_FEATURES].reshape(B, 1, 7, 7)


def init_params(key):
    """PyTorch-nn.Linear-shaped params; weights stored (in, out) so x @ W + b."""
    params = []
    for i, (fan_in, fan_out) in enumerate(_DIMS):
        kw, kb = jax.random.split(jax.random.fold_in(key, i))
        bound = 1.0 / jnp.sqrt(jnp.float32(fan_in))
        w = jax.random.uniform(kw, (fan_in, fan_out), jnp.float32, -bound, bound)
        b = jax.random.uniform(kb, (1, fan_out), jnp.float32, -bound, bound)
        params += [w, b]
    return tuple(params)


def ae_reference(x_nchw, params):
    """Pure-JAX f32 reference for correctness checking."""
    w1, b1, w2, b2, w3, b3, w4, b4 = params
    x = x_nchw.reshape(x_nchw.shape[0], -1)
    x = jnp.maximum(x @ w1 + b1, 0.0)
    x = jnp.maximum(x @ w2 + b2, 0.0)
    x = jnp.maximum(x @ w3 + b3, 0.0)
    x = x @ w4 + b4
    return x.reshape(-1, 1, 7, 7)


if __name__ == "__main__":
    key = jax.random.PRNGKey(0)
    k_x, k_p = jax.random.split(key)
    params = init_params(k_p)

    def check(B, tol, seed, **kw):
        x = jax.random.normal(jax.random.fold_in(k_x, seed), (B, 1, 7, 7), jnp.float32)
        out = jax.block_until_ready(ae_forward(x, params, **kw))
        ref = ae_reference(x, params)
        assert out.shape == (B, 1, 7, 7), f"bad shape {out.shape}"
        assert jnp.allclose(out.astype(jnp.float32), ref, atol=tol, rtol=tol), \
            f"mismatch vs reference (B={B}, kw={kw})"

    check(8, 5e-2, 0)                                    # bf16 default path
    check(8, 1e-5, 0, compute_dtype=jnp.float32)         # exact f32 path
    check(13, 1e-5, 1, compute_dtype=jnp.float32)        # ragged batch / padding
    check(600, 1e-5, 2, compute_dtype=jnp.float32)       # deeper pipeline (n_sub=3)
    check(1100, 1e-5, 3, compute_dtype=jnp.float32,      # multi-tile grid + pipeline
          max_tile=512)
    check(300, 5e-2, 4, max_tile=128)                    # bf16, multi-tile, small SB

    print("KERNEL_OK")
</pallas_src>

<mosaic_0001>
module attributes {stable_mosaic.version = 11 : i64} {
  func.func @kernel(%arg0: i32, %arg1: memref<8x128xbf16, #tpu.memory_space<vmem>>, %arg2: memref<128x128xbf16, #tpu.memory_space<vmem>>, %arg3: memref<8x128xbf16, #tpu.memory_space<vmem>>) attributes {dimension_semantics = [#tpu.dimension_semantics<parallel>], iteration_bounds = array<i64: 1>, scalar_prefetch = 0 : i64, scratch_operands = 0 : i64, tpu.core_type = #tpu.core_type<tc>, window_params = [{transform_indices = @transform_0, window_bounds = array<i64: 8, 128>}, {pipeline_mode = #tpu.pipeline_mode<synchronous>, transform_indices = @transform_1, window_bounds = array<i64: 128, 128>}, {transform_indices = @transform_2, window_bounds = array<i64: 8, 128>}]} {
    %c0 = arith.constant 0 : index
    %c0_0 = arith.constant 0 : index
    %0 = vector.load %arg2[%c0, %c0_0] : memref<128x128xbf16, #tpu.memory_space<vmem>>, vector<128x128xbf16>
    %1 = tpu.iota {dimensions = array<i32: 1>} : vector<8x128xi32>
    %c49_i32 = arith.constant 49 : i32
    %2 = vector.broadcast %c49_i32 : i32 to vector<8x128xi32>
    %3 = arith.cmpi slt, %1, %2 : vector<8x128xi32>
    %c121_i32 = arith.constant 121 : i32
    %4 = vector.broadcast %c121_i32 : i32 to vector<8x128xi32>
    %5 = arith.cmpi eq, %1, %4 : vector<8x128xi32>
    %6 = arith.ori %3, %5 : vector<8x128xi1>
    %c121_i32_1 = arith.constant 121 : i32
    %7 = vector.broadcast %c121_i32_1 : i32 to vector<8x128xi32>
    %8 = arith.cmpi eq, %1, %7 : vector<8x128xi32>
    %9 = arith.extui %8 : vector<8x128xi1> to vector<8x128xi32>
    %10 = arith.sitofp %9 : vector<8x128xi32> to vector<8x128xf32>
    %11 = arith.truncf %10 : vector<8x128xf32> to vector<8x128xbf16>
    %cst = arith.constant 0.000000e+00 : bf16
    %12 = vector.broadcast %cst : bf16 to vector<8x128xbf16>
    %c0_2 = arith.constant 0 : index
    %c0_3 = arith.constant 0 : index
    %13 = vector.load %arg1[%c0_2, %c0_3] : memref<8x128xbf16, #tpu.memory_space<vmem>>, vector<8x128xbf16>
    %14 = arith.select %6, %13, %12 : vector<8x128xi1>, vector<8x128xbf16>
    %cst_4 = arith.constant dense<0.000000e+00> : vector<8x128xf32>
    %15 = tpu.matmul %14, %0, %cst_4 {dimension_numbers = #tpu.dot_dimension_numbers<[1], [0], [0], [1], [0, 0, 1, 1], [], []>} : vector<8x128xbf16>, vector<128x128xbf16>, vector<8x128xf32> -> vector<8x128xf32>
    %cst_5 = arith.constant 0.000000e+00 : f32
    %16 = vector.broadcast %cst_5 : f32 to vector<8x128xf32>
    %17 = arith.maximumf %15, %16 : vector<8x128xf32>
    %18 = arith.truncf %17 : vector<8x128xf32> to vector<8x128xbf16>
    %19 = arith.select %6, %11, %18 : vector<8x128xi1>, vector<8x128xbf16>
    %cst_6 = arith.constant dense<0.000000e+00> : vector<8x128xf32>
    %20 = tpu.matmul %19, %0, %cst_6 {dimension_numbers = #tpu.dot_dimension_numbers<[1], [0], [0], [1], [0, 0, 1, 1], [], []>} : vector<8x128xbf16>, vector<128x128xbf16>, vector<8x128xf32> -> vector<8x128xf32>
    %cst_7 = arith.constant 0.000000e+00 : f32
    %21 = vector.broadcast %cst_7 : f32 to vector<8x128xf32>
    %22 = arith.maximumf %20, %21 : vector<8x128xf32>
    %23 = arith.truncf %22 : vector<8x128xf32> to vector<8x128xbf16>
    %24 = arith.select %6, %11, %23 : vector<8x128xi1>, vector<8x128xbf16>
    %cst_8 = arith.constant dense<0.000000e+00> : vector<8x128xf32>
    %25 = tpu.matmul %24, %0, %cst_8 {dimension_numbers = #tpu.dot_dimension_numbers<[1], [0], [0], [1], [0, 0, 1, 1], [], []>} : vector<8x128xbf16>, vector<128x128xbf16>, vector<8x128xf32> -> vector<8x128xf32>
    %cst_9 = arith.constant 0.000000e+00 : f32
    %26 = vector.broadcast %cst_9 : f32 to vector<8x128xf32>
    %27 = arith.maximumf %25, %26 : vector<8x128xf32>
    %28 = arith.truncf %27 : vector<8x128xf32> to vector<8x128xbf16>
    %29 = arith.select %6, %11, %28 : vector<8x128xi1>, vector<8x128xbf16>
    %cst_10 = arith.constant dense<0.000000e+00> : vector<8x128xf32>
    %30 = tpu.matmul %29, %0, %cst_10 {dimension_numbers = #tpu.dot_dimension_numbers<[1], [0], [0], [1], [0, 0, 1, 1], [], []>} : vector<8x128xbf16>, vector<128x128xbf16>, vector<8x128xf32> -> vector<8x128xf32>
    %31 = arith.truncf %30 : vector<8x128xf32> to vector<8x128xbf16>
    %c0_11 = arith.constant 0 : index
    %c0_12 = arith.constant 0 : index
    %32 = vector.load %arg3[%c0_11, %c0_12] : memref<8x128xbf16, #tpu.memory_space<vmem>>, vector<8x128xbf16>
    tpu.vector_store %arg3[%c0_11, %c0_12], %31 {strides = array<i32>} : memref<8x128xbf16, #tpu.memory_space<vmem>>, vector<8x128xbf16>,
    return
  }
  func.func @transform_0(%arg0: i32) -> (i32, i32) {
    %c0_i32 = arith.constant 0 : i32
    %c0_i32_0 = arith.constant 0 : i32
    return %arg0, %c0_i32 : i32, i32
  }
  func.func @transform_1(%arg0: i32) -> (i32, i32) {
    %c0_i32 = arith.constant 0 : i32
    %c0_i32_0 = arith.constant 0 : i32
    %c0_i32_1 = arith.constant 0 : i32
    return %c0_i32, %c0_i32_0 : i32, i32
  }
  func.func @transform_2(%arg0: i32) -> (i32, i32) {
    %c0_i32 = arith.constant 0 : i32
    %c0_i32_0 = arith.constant 0 : i32
    return %arg0, %c0_i32 : i32, i32
  }
}

</mosaic_0001>

<bundles_post_ra>
// kernel: tpu_custom_call.1
= control target key start
LH: loop header
LB: loop body
LE: loop exit
PB: predicated region body
PF: predicated region fallthrough
CT: control target
= control target key end

     0   :  { %7 = vsyncpa [#allocation3], 0  ;;  %s623_s0 = inlined_call_operand.hbm [shape: bf16[8,128], index: 0, kind: input, shape index: {}]   ;;  %s624_s1 = inlined_call_operand.hbm [shape: bf16[128,128], index: 1, kind: input, shape index: {}]   ;;  %s625_s2 = inlined_call_operand.hbm [shape: bf16[8,128], index: 2, kind: output, shape index: {}]  }
   0x1   :  { %8 = vsyncpa [#allocation6], 0 }
   0x2   :  { %9 = vsyncpa [#allocation4], 0  ;;  %s507_s9 = smov [#allocation2]   ;;  %s508_s11 = smov [#allocation5]  }
   0x3   :  { %s16_s10 = sshll.u32 %s507_s9, 4  ;;  %s25_s12 = sshll.u32 %s508_s11, 4  ;;  %s17_s10 = int_to_ptr.vmem [resolvable:$true] %s16_s10  ;;  %s26_s12 = int_to_ptr.vmem [resolvable:$true] %s25_s12 }
   0x4   :  { %s449_s13 = scalar_lea.vmem %s17_s10, 64  ;;  %p454_p1 = scmp.lt.s32.totalorder %s17_s10, %s17_s10 }
   0x5   :  { %p450_p0 = scmp.ne.s32.totalorder %s17_s10, %s449_s13  ;;  %p455_p2 = scmp.lt.s32.totalorder %s449_s13, %s449_s13 }
   0x7   :  { %p456_p3 = por %p455_p2, %p454_p1 }
   0x9   :  { %p457_p4 = pnand %p456_p3, %p450_p0 }
   0xb   :  { %460 = shalt.err (!%p457_p4)
}
   0xc   :  { %19 = dma.hbm_to_vmem [thread:$0]  %s623_s0, 64, %s17_s10, [#allocation3]  }
   0xd   :  { %s469_s16 = scalar_lea.vmem %s26_s12, 1024  ;;  %p474_p6 = scmp.lt.s32.totalorder %s26_s12, %s26_s12 }
   0xe   :  { %p470_p5 = scmp.ne.s32.totalorder %s26_s12, %s469_s16  ;;  %p475_p7 = scmp.lt.s32.totalorder %s469_s16, %s469_s16 }
  0x10   :  { %p476_p8 = por %p475_p7, %p474_p6 }
  0x12   :  { %p477_p9 = pnand %p476_p8, %p470_p5 }
  0x14   :  { %480 = shalt.err (!%p477_p9)
}
  0x15   :  { %s509_s17 = smov 64   ;;  %s510_s18 = smov 4  }
  0x16   :  { %31 = dma.hbm_to_vmem [thread:$0]  %s624_s1, 1024, %s26_s12, [#allocation6], %s509_s17, %s509_s17, %s510_s18  }
  0x17   :  { %501 = dma.done.wait [#allocation3], 64  }
  0x18   :  { %502 = vsyncadd [#allocation3], 4294967232 }
  0x19   :  { %503 = dma.done.wait [#allocation6], 1024  }
  0x1a   :  { %504 = vsyncadd [#allocation6], 4294966272  ;;  %v511_v0 = vmov 0.0   ;;  %vm512_vm0 = vmmov 0   ;;  %v541_v1 = vld [vmem:[#allocation5 + $0x38] sm:$0xff]   ;;  %v544_v2 = vld [vmem:[#allocation5 + $0x30] sm:$0xff]   ;;  %v55_v5 = vlaneseq }
  0x1b   :  { %346 = vmatprep.subr.bf16.mxu0 %v511_v0  ;;  %362 = vmatprep.mubr.msk.bf16.mxu0 %vm512_vm0, %v511_v0  ;;  %v550_v3 = vld [vmem:[#allocation5 + $0x28] sm:$0xff]   ;;  %v556_v4 = vld [vmem:[#allocation5 + $0x20] sm:$0xff]   ;;  %v562_v6 = vld [vmem:[#allocation5 + $0x18] sm:$0xff]   ;;  %s513_s0 = smov [#allocation7]  }
  0x1c   :  { %366 = vmatprep.subr.bf16.mxu1 %v511_v0  ;;  %382 = vmatprep.mubr.msk.bf16.mxu1 %vm512_vm0, %v511_v0  ;;  %v56_v7 = vand.u32 127, %v55_v5  ;;  %v438_v8 = vld [vmem:[#allocation5 + $0x10] sm:$0xff]   ;;  %v439_v9 = vld [vmem:[#allocation5 + $0x8] sm:$0xff]   ;;  %v440_v10 = vld [vmem:[#allocation5] sm:$0xff]   ;;  %s291_s1 = sshll.u32 %s513_s0, 4  ;;  %s292_s1 = int_to_ptr.vmem [resolvable:$true] %s291_s1 }
  0x1d   :  { %347 = vmatpush3.bf16.msra.mxu0 %v541_v1  ;;  %367 = vmatpush3.bf16.msra.mxu1 %v541_v1  ;;  %v63_v11 = vld [vmem:[#allocation2] sm:$0xf]  ;;  %s481_s21 = scalar_lea.vmem %s292_s1, 64  ;;  %p486_p11 = scmp.lt.s32.totalorder %s292_s1, %s292_s1 }
  0x1e   :  { %348 = vmatprep.subr.bf16.mxu0 %v511_v0  ;;  %368 = vmatprep.subr.bf16.mxu1 %v511_v0  ;;  %vm57_vm1 = vcmp.lt.s32.totalorder %v56_v7, 49  ;;  %vm58_vm2 = vcmp.eq.s32.totalorder %v56_v7, 121  ;;  %p482_p10 = scmp.ne.s32.totalorder %s292_s1, %s481_s21  ;;  %p487_p12 = scmp.lt.s32.totalorder %s481_s21, %s481_s21 }
  0x1f   :  { %vm59_vm3 = vmor %vm57_vm1, %vm58_vm2  ;;  %v301_v14 = vsel %vm58_vm2, 1.0, %v511_v0 }
  0x20   :  { %vm575_vm4 = vmpackc.low %vm59_vm3, %vm59_vm3  ;;  %v62_v17 = vpack.c.bf16 %v301_v14, %v301_v14  ;;  %p488_p13 = por %p487_p12, %p486_p11 }
  0x21   :  { %349 = vmatpush3.bf16.msra.mxu0 %v544_v2  ;;  %369 = vmatpush3.bf16.msra.mxu1 %v544_v2  ;;  %v65_v13 = vsel %vm575_vm4, %v63_v11, 0 }
  0x22   :  { %350 = vmatprep.subr.bf16.mxu0 %v511_v0  ;;  %370 = vmatprep.subr.bf16.mxu1 %v511_v0  ;;  %p489_p0 = pnand %p488_p13, %p482_p10 }
  0x25   :  { %351 = vmatpush3.bf16.msra.mxu0 %v550_v3  ;;  %371 = vmatpush3.bf16.msra.mxu1 %v550_v3 }
  0x26   :  { %352 = vmatprep.subr.bf16.mxu0 %v511_v0  ;;  %372 = vmatprep.subr.bf16.mxu1 %v511_v0 }
  0x29   :  { %353 = vmatpush3.bf16.msra.mxu0 %v556_v4  ;;  %373 = vmatpush3.bf16.msra.mxu1 %v556_v4 }
  0x2a   :  { %354 = vmatprep.subr.bf16.mxu0 %v511_v0  ;;  %374 = vmatprep.subr.bf16.mxu1 %v511_v0 }
  0x2d   :  { %355 = vmatpush3.bf16.msra.mxu0 %v562_v6  ;;  %375 = vmatpush3.bf16.msra.mxu1 %v562_v6 }
  0x2e   :  { %356 = vmatprep.subr.bf16.mxu0 %v511_v0  ;;  %376 = vmatprep.subr.bf16.mxu1 %v511_v0 }
  0x31   :  { %357 = vmatpush3.bf16.msra.mxu0 %v438_v8  ;;  %377 = vmatpush3.bf16.msra.mxu1 %v438_v8 }
  0x32   :  { %358 = vmatprep.subr.bf16.mxu0 %v511_v0  ;;  %378 = vmatprep.subr.bf16.mxu1 %v511_v0 }
  0x35   :  { %359 = vmatpush3.bf16.msra.mxu0 %v439_v9  ;;  %379 = vmatpush3.bf16.msra.mxu1 %v439_v9 }
  0x36   :  { %360 = vmatprep.subr.bf16.mxu0 %v511_v0  ;;  %380 = vmatprep.subr.bf16.mxu1 %v511_v0 }
  0x39   :  { %361 = vmatpush3.bf16.msra.mxu0 %v440_v10  ;;  %381 = vmatpush3.bf16.msra.mxu1 %v440_v10 }
  0x3a   :  { %386 = vmatprep.subr.bf16.mxu0 %v511_v0  ;;  %406 = vmatprep.subr.bf16.mxu1 %v511_v0 }
  0x3c   :  { %363 = vmatmul.mubr.bf16.vlgmr.msra.gmra.mxu0 %v65_v13 }
  0x3d   :  { %387 = vmatpush3.bf16.msra.mxu0 %v541_v1  ;;  %402 = vmatprep.mubr.msk.bf16.mxu0 %vm512_vm0, %v511_v0 }
  0x3e   :  { %388 = vmatprep.subr.bf16.mxu0 %v511_v0 }
  0x41   :  { %389 = vmatpush3.bf16.msra.mxu0 %v544_v2 }
  0x42   :  { %390 = vmatprep.subr.bf16.mxu0 %v511_v0 }
  0x45   :  { %391 = vmatpush3.bf16.msra.mxu0 %v550_v3 }
  0x46   :  { %392 = vmatprep.subr.bf16.mxu0 %v511_v0 }
  0x49   :  { %393 = vmatpush3.bf16.msra.mxu0 %v556_v4 }
  0x4a   :  { %394 = vmatprep.subr.bf16.mxu0 %v511_v0 }
  0x4d   :  { %395 = vmatpush3.bf16.msra.mxu0 %v562_v6 }
  0x4e   :  { %396 = vmatprep.subr.bf16.mxu0 %v511_v0 }
  0x51   :  { %397 = vmatpush3.bf16.msra.mxu0 %v438_v8 }
  0x52   :  { %398 = vmatprep.subr.bf16.mxu0 %v511_v0 }
  0x55   :  { %399 = vmatpush3.bf16.msra.mxu0 %v439_v9 }
  0x56   :  { %400 = vmatprep.subr.bf16.mxu0 %v511_v0 }
  0x59   :  { %401 = vmatpush3.bf16.msra.mxu0 %v440_v10 }
  0xfc   :  { %v148_v15 = vpop.f32.mrf.mxu0 }
  0xfd   :  { %v154_v16 = vmax.f32 %v148_v15, 0.0 }
  0xfe   :  { %v364_v18 = vpop.f32.mrf.mxu0 }
  0xff   :  { %v155_v19 = vpack.c.bf16 %v154_v16, %v154_v16 }
 0x100   :  { %v151_v20 = vpop.f32.mrf.mxu0 }
 0x101   :  { %v156_v21 = vsel %vm575_vm4, %v62_v17, %v155_v19 }
 0x102   :  { %v365_v22 = vpop.f32.mrf.mxu0  ;;  %383 = vmatmul.mubr.bf16.vlgmr.msra.gmra.mxu1 %v156_v21 }
 0x103   :  { %407 = vmatpush3.bf16.msra.mxu1 %v541_v1  ;;  %422 = vmatprep.mubr.msk.bf16.mxu1 %vm512_vm0, %v511_v0 }
 0x104   :  { %408 = vmatprep.subr.bf16.mxu1 %v511_v0 }
 0x107   :  { %409 = vmatpush3.bf16.msra.mxu1 %v544_v2 }
 0x108   :  { %410 = vmatprep.subr.bf16.mxu1 %v511_v0 }
 0x10b   :  { %411 = vmatpush3.bf16.msra.mxu1 %v550_v3 }
 0x10c   :  { %412 = vmatprep.subr.bf16.mxu1 %v511_v0 }
 0x10f   :  { %413 = vmatpush3.bf16.msra.mxu1 %v556_v4 }
 0x110   :  { %414 = vmatprep.subr.bf16.mxu1 %v511_v0 }
 0x113   :  { %415 = vmatpush3.bf16.msra.mxu1 %v562_v6 }
 0x114   :  { %416 = vmatprep.subr.bf16.mxu1 %v511_v0 }
 0x117   :  { %417 = vmatpush3.bf16.msra.mxu1 %v438_v8 }
 0x118   :  { %418 = vmatprep.subr.bf16.mxu1 %v511_v0 }
 0x11b   :  { %419 = vmatpush3.bf16.msra.mxu1 %v439_v9 }
 0x11c   :  { %420 = vmatprep.subr.bf16.mxu1 %v511_v0 }
 0x11f   :  { %421 = vmatpush3.bf16.msra.mxu1 %v440_v10 }
 0x1c2   :  { %v191_v23 = vpop.f32.mrf.mxu1 }
 0x1c3   :  { %v197_v24 = vmax.f32 %v191_v23, 0.0 }
 0x1c4   :  { %v384_v25 = vpop.f32.mrf.mxu1 }
 0x1c5   :  { %v198_v26 = vpack.c.bf16 %v197_v24, %v197_v24 }
 0x1c6   :  { %v194_v27 = vpop.f32.mrf.mxu1 }
 0x1c7   :  { %v199_v28 = vsel %vm575_vm4, %v62_v17, %v198_v26 }
 0x1c8   :  { %v385_v29 = vpop.f32.mrf.mxu1  ;;  %403 = vmatmul.mubr.bf16.vlgmr.msra.gmra.mxu0 %v199_v28 }
 0x288   :  { %v234_v30 = vpop.f32.mrf.mxu0 }
 0x289   :  { %v240_v31 = vmax.f32 %v234_v30, 0.0 }
 0x28a   :  { %v404_v32 = vpop.f32.mrf.mxu0 }
 0x28b   :  { %v241_v33 = vpack.c.bf16 %v240_v31, %v240_v31 }
 0x28c   :  { %v237_v34 = vpop.f32.mrf.mxu0 }
 0x28d   :  { %v242_v35 = vsel %vm575_vm4, %v62_v17, %v241_v33 }
 0x28e   :  { %v405_v36 = vpop.f32.mrf.mxu0  ;;  %423 = vmatmul.mubr.bf16.vlgmr.msra.gmra.mxu1 %v242_v35 }
 0x34e   :  { %v277_v37 = vpop.f32.mrf.mxu1 }
 0x34f   :  { %v283_v38 = vpack.c.bf16 %v277_v37, %v277_v37 }
 0x350   :  { %v424_v39 = vpop.f32.mrf.mxu1 }
 0x351   :  { %284 = vst [vmem:[#allocation7] sm:$0xf] %v283_v38 }
 0x352   :  { %v280_v40 = vpop.f32.mrf.mxu1 }
 0x353   :  { %492 = shalt.err (!%p489_p0)
}
 0x354   :  { %294 = dma.vmem_to_hbm [thread:$0]  %s292_s1, 64, %s625_s2, [#allocation4]   ;;  %v425_v41 = vpop.f32.mrf.mxu1 }
 0x355   :  { %505 = dma.done.wait [#allocation4], 64  }
 0x356   :  { %506 = vsyncadd [#allocation4], 4294967232 }
 0x357   :  { %298 = vsyncpa [#allocation3], 1 }
 0x358   :  { %299 = vsyncpa [#allocation6], 1 }
 0x359   :  { %300 = vsyncpa [#allocation4], 1 }

</bundles_post_ra>
